<compile_context>
chip_gen: v7x
topology: tpu7x:2x2x1
jax: 0.10.0
libtpu: 0.0.40
codegen_flags: <defaults>
</compile_context>

<pallas_src>
import functools
import math

import jax
import jax.numpy as jnp
from jax.experimental import pallas as pl
from jax.experimental.pallas import tpu as pltpu

_LANE = 128                      # TPU vreg lane width
_SMALL_FASTPATH_BYTES = 256 * 1024
_MAX_TILE_BYTES = 8 * 1024 * 1024   # per-buffer cap -> 2x double-buffer << 64 MiB


def _round_up(x, m):
    return ((x + m - 1) // m) * m


# ----------------------------------------------------------------------------
# Kernels
# ----------------------------------------------------------------------------
def _age_kernel_transposed(t_ref, out_ref, *, half, neg_scale):
    # t_ref:   (1, TILE_B)              f32, lane-dense load
    # out_ref: (n_channels, TILE_B)     rows [0, half) = sin, [half, 2*half) = cos
    t = t_ref[...]                                               # (1, TILE_B)
    idx = jax.lax.broadcasted_iota(jnp.int32, (half, 1), 0).astype(jnp.float32)
    freq = jnp.exp(idx * neg_scale)                              # (half, 1)
    emb = freq * t                                               # (half, TILE_B)
    # Two direct slice stores; half % 8 (16 for bf16) is guaranteed by the
    # wrapper so both stores stay sublane-aligned.
    out_ref[:half, :] = jnp.sin(emb).astype(out_ref.dtype)
    out_ref[half:, :] = jnp.cos(emb).astype(out_ref.dtype)


def _age_kernel_natural(t_ref, out_ref, *, half, neg_scale):
    # t_ref:   (TILE_B, 1)              f32, batch on the sublane axis
    # out_ref: (TILE_B, n_channels)     lanes [0, half) = sin, [half, 2*half) = cos
    t = t_ref[...]                                               # (TILE_B, 1)
    idx = jax.lax.broadcasted_iota(jnp.int32, (1, half), 1).astype(jnp.float32)
    freq = jnp.exp(idx * neg_scale)                              # (1, half)
    emb = t * freq                                               # (TILE_B, half)
    out_ref[:, :half] = jnp.sin(emb).astype(out_ref.dtype)
    out_ref[:, half:] = jnp.cos(emb).astype(out_ref.dtype)


# ----------------------------------------------------------------------------
# Pure-JAX reference (also the small-B fast path)
# ----------------------------------------------------------------------------
def age_embedding_ref(t, n_channels):
    half = n_channels // 2
    scale = math.log(10000.0) / (half - 1)
    freq = jnp.exp(jnp.arange(half, dtype=jnp.float32) * (-scale))
    emb = t.astype(jnp.float32)[:, None] * freq[None, :]
    return jnp.concatenate([jnp.sin(emb), jnp.cos(emb)], axis=1)


# ----------------------------------------------------------------------------
# Wrapper
# ----------------------------------------------------------------------------
def age_embedding(
    t,
    n_channels,
    *,
    out_dtype=jnp.float32,
    transposed_output=False,
    target_tile_bytes=4 * 1024 * 1024,
    use_pallas=None,
    core_parallel=False,
):
    """Pallas implementation of AgeEmbedding.forward.

    Args:
      t: (B,) ages / timesteps.
      n_channels: embedding width (even, >= 4).
      out_dtype: f32 (default, matches reference) or bf16 (halves HBM writeback).
      transposed_output: if True, return (n_channels, B) (lane-dense layout for
        the consumer, skips the transpose for narrow widths).
      target_tile_bytes: per-tile output byte budget (clamped to 8 MiB).
      use_pallas: None = auto (size-based), True/False = force.
      core_parallel: use pltpu.CORE_PARALLEL on the batch grid axis (v7x 2-TC).
    Returns:
      (B, n_channels) embedding = concat([sin(t*freq), cos(t*freq)], axis=1)
      (or its transpose if transposed_output).
    """
    if n_channels % 2 != 0 or n_channels < 4:
        raise ValueError("n_channels must be an even integer >= 4")
    half = n_channels // 2
    neg_scale = -math.log(10000.0) / (half - 1)

    B = int(t.shape[0])
    itemsize = jnp.dtype(out_dtype).itemsize
    out_bytes = B * n_channels * itemsize
    sublane_align = 8 if itemsize >= 4 else 32 // itemsize   # 8 f32, 16 bf16

    natural_ok = (n_channels % _LANE == 0)
    transposed_ok = (half % sublane_align == 0)

    if use_pallas is None:
        use_pallas = out_bytes > _SMALL_FASTPATH_BYTES
    if use_pallas and not (natural_ok or transposed_ok):
        use_pallas = False   # tiny/unaligned widths: fused XLA is fine

    if not use_pallas:
        out = age_embedding_ref(t, n_channels).astype(out_dtype)
        return out.T if transposed_output else out

    target_tile_bytes = min(int(target_tile_bytes), _MAX_TILE_BYTES)
    sem = pltpu.CORE_PARALLEL if core_parallel else "parallel"
    cparams = pltpu.CompilerParams(
        dimension_semantics=(sem,),
        vmem_limit_bytes=32 * 1024 * 1024,
    )

    if natural_ok and not transposed_output:
        # ---- natural layout: (B, n_channels) output, no wrapper transpose ----
        row_bytes = n_channels * itemsize
        rows_target = max(sublane_align,
                          (target_tile_bytes // row_bytes) // sublane_align * sublane_align)
        padded_b = _round_up(B, sublane_align)
        num_tiles = pl.cdiv(padded_b, rows_target)
        tile_rows = _round_up(pl.cdiv(padded_b, num_tiles), sublane_align)
        padded_b = num_tiles * tile_rows

        t_col = jnp.pad(t.astype(jnp.float32), (0, padded_b - B))[:, None]

        out = pl.pallas_call(
            functools.partial(_age_kernel_natural, half=half, neg_scale=neg_scale),
            out_shape=jax.ShapeDtypeStruct((padded_b, n_channels), out_dtype),
            grid_spec=pltpu.PrefetchScalarGridSpec(
                num_scalar_prefetch=0,
                grid=(num_tiles,),
                in_specs=[pl.BlockSpec((tile_rows, 1), lambda i: (i, 0))],
                out_specs=pl.BlockSpec((tile_rows, n_channels), lambda i: (i, 0)),
            ),
            compiler_params=cparams,
        )(t_col)
        return out[:B]

    # ---- transposed layout: (n_channels, B_pad) output, lane-dense stores ----
    col_bytes = n_channels * itemsize
    lanes_target = max(_LANE, (target_tile_bytes // col_bytes) // _LANE * _LANE)
    padded_b = _round_up(B, _LANE)
    num_tiles = pl.cdiv(padded_b, lanes_target)
    tile_b = _round_up(pl.cdiv(padded_b, num_tiles), _LANE)
    padded_b = num_tiles * tile_b

    t_row = jnp.pad(t.astype(jnp.float32), (0, padded_b - B))[None, :]

    out_t = pl.pallas_call(
        functools.partial(_age_kernel_transposed, half=half, neg_scale=neg_scale),
        out_shape=jax.ShapeDtypeStruct((n_channels, padded_b), out_dtype),
        grid_spec=pltpu.PrefetchScalarGridSpec(
            num_scalar_prefetch=0,
            grid=(num_tiles,),
            in_specs=[pl.BlockSpec((1, tile_b), lambda i: (0, i))],
            out_specs=pl.BlockSpec((n_channels, tile_b), lambda i: (0, i)),
        ),
        compiler_params=cparams,
    )(t_row)

    if transposed_output:
        return out_t[:, :B]
    # For narrow widths the PyTorch (B, n_channels) layout needs a transpose;
    # prefer transposed_output=True when the consumer can contract either way.
    return out_t[:, :B].T


# ----------------------------------------------------------------------------
# Self-test
# ----------------------------------------------------------------------------
if __name__ == "__main__":
    key = jax.random.PRNGKey(0)
    k1, k2, k3, k4 = jax.random.split(key, 4)

    # 1) Small-B auto path (pure-JAX fast path), B=8, n_channels=32.
    t1 = jax.random.uniform(k1, (8,), jnp.float32, minval=0.0, maxval=100.0)
    o1 = jax.block_until_ready(age_embedding(t1, 32))
    r1 = age_embedding_ref(t1, 32)
    assert o1.shape == (8, 32) and o1.dtype == jnp.float32
    assert jnp.allclose(o1, r1, atol=1e-4, rtol=1e-4)

    # 2) Narrow width, forced Pallas (transposed-layout kernel), B=200.
    t2 = jax.random.uniform(k2, (200,), jnp.float32, minval=0.0, maxval=100.0)
    o2 = jax.block_until_ready(age_embedding(t2, 32, use_pallas=True))
    r2 = age_embedding_ref(t2, 32)
    assert o2.shape == (200, 32)
    assert jnp.allclose(o2, r2, atol=1e-4, rtol=1e-4)
    # ... and the consumer-friendly transposed output (no wrapper transpose).
    o2t = jax.block_until_ready(
        age_embedding(t2, 32, use_pallas=True, transposed_output=True))
    assert o2t.shape == (32, 200)
    assert jnp.allclose(o2t, r2.T, atol=1e-4, rtol=1e-4)

    # 3) Wide width, natural-layout kernel, multi-tile grid (tiny tile budget
    #    forces several grid steps + batch padding slice), B=300, n_channels=128.
    t3 = jax.random.uniform(k3, (300,), jnp.float32, minval=0.0, maxval=100.0)
    o3 = jax.block_until_ready(
        age_embedding(t3, 128, use_pallas=True, target_tile_bytes=32 * 1024))
    r3 = age_embedding_ref(t3, 128)
    assert o3.shape == (300, 128)
    assert jnp.allclose(o3, r3, atol=1e-4, rtol=1e-4)

    # 4) bf16 output (compute stays f32), natural-layout kernel.
    t4 = jax.random.uniform(k4, (64,), jnp.float32, minval=0.0, maxval=100.0)
    o4 = jax.block_until_ready(
        age_embedding(t4, 128, use_pallas=True, out_dtype=jnp.bfloat16))
    r4 = age_embedding_ref(t4, 128)
    assert o4.shape == (64, 128) and o4.dtype == jnp.bfloat16
    assert jnp.allclose(o4.astype(jnp.float32), r4, atol=1e-2, rtol=1e-2)

    print("KERNEL_OK")
</pallas_src>

<mosaic_0001>
module attributes {stable_mosaic.version = 11 : i64} {
  func.func @_age_kernel_transposed(%arg0: i32, %arg1: memref<1x256xf32, #tpu.memory_space<vmem>>, %arg2: memref<32x256xf32, #tpu.memory_space<vmem>>) attributes {dimension_semantics = [#tpu.dimension_semantics<parallel>], iteration_bounds = array<i64: 1>, scalar_prefetch = 0 : i64, scratch_operands = 0 : i64, tpu.core_type = #tpu.core_type<tc>, window_params = [{transform_indices = @transform_0, window_bounds = array<i64: 1, 256>}, {transform_indices = @transform_1, window_bounds = array<i64: 32, 256>}]} {
    %c0 = arith.constant 0 : index
    %c0_0 = arith.constant 0 : index
    %0 = vector.load %arg1[%c0, %c0_0] : memref<1x256xf32, #tpu.memory_space<vmem>>, vector<1x256xf32>
    %1 = tpu.iota {dimensions = array<i32: 0>} : vector<16x1xi32>
    %2 = arith.sitofp %1 : vector<16x1xi32> to vector<16x1xf32>
    %cst = arith.constant -0.614022672 : f32
    %3 = vector.broadcast %cst : f32 to vector<16x1xf32>
    %4 = arith.mulf %2, %3 : vector<16x1xf32>
    %5 = math.exp %4 : vector<16x1xf32>
    %6 = vector.broadcast %5 : vector<16x1xf32> to vector<16x256xf32>
    %7 = vector.broadcast %0 : vector<1x256xf32> to vector<16x256xf32>
    %8 = arith.mulf %6, %7 : vector<16x256xf32>
    %9 = math.sin %8 : vector<16x256xf32>
    %c0_1 = arith.constant 0 : index
    %c0_2 = arith.constant 0 : index
    %10 = vector.load %arg2[%c0_1, %c0_2] : memref<32x256xf32, #tpu.memory_space<vmem>>, vector<16x256xf32>
    tpu.vector_store %arg2[%c0_1, %c0_2], %9 {strides = array<i32>} : memref<32x256xf32, #tpu.memory_space<vmem>>, vector<16x256xf32>,
    %11 = math.cos %8 : vector<16x256xf32>
    %c16 = arith.constant 16 : index
    %c0_3 = arith.constant 0 : index
    %12 = vector.load %arg2[%c16, %c0_3] : memref<32x256xf32, #tpu.memory_space<vmem>>, vector<16x256xf32>
    tpu.vector_store %arg2[%c16, %c0_3], %11 {strides = array<i32>} : memref<32x256xf32, #tpu.memory_space<vmem>>, vector<16x256xf32>,
    return
  }
  func.func @transform_0(%arg0: i32) -> (i32, i32) {
    %c0_i32 = arith.constant 0 : i32
    %c0_i32_0 = arith.constant 0 : i32
    return %c0_i32, %arg0 : i32, i32
  }
  func.func @transform_1(%arg0: i32) -> (i32, i32) {
    %c0_i32 = arith.constant 0 : i32
    %c0_i32_0 = arith.constant 0 : i32
    return %c0_i32, %arg0 : i32, i32
  }
}

</mosaic_0001>

<bundles_post_ra>
// kernel: tpu_custom_call.1
= control target key start
LH: loop header
LB: loop body
LE: loop exit
PB: predicated region body
PF: predicated region fallthrough
CT: control target
= control target key end

     0   :  { %6 = vsyncpa [#allocation3], 0  ;;  %s1415_s0 = inlined_call_operand.hbm [shape: f32[1,256], index: 0, kind: input, shape index: {}]   ;;  %s1416_s1 = inlined_call_operand.hbm [shape: f32[32,256], index: 1, kind: output, shape index: {}]  }
   0x1   :  { %7 = vsyncpa [#allocation4], 0  ;;  %s1027_s6 = smov [#allocation2]   ;;  %s979_s10 = scalar_lea.hbm %s1415_s0, 32 }
   0x2   :  { %s14_s7 = sshll.u32 %s1027_s6, 4  ;;  %p980_p0 = scmp.ne.s32.totalorder %s1415_s0, %s979_s10  ;;  %s15_s7 = int_to_ptr.vmem [resolvable:$true] %s14_s7 }
   0x3   :  { %p983_p1 = scmp.lt.u32.totalorder %s979_s10, %s1415_s0 }
   0x5   :  { %p985_p2 = pnand %p983_p1, %p980_p0 }
   0x7   :  { %988 = shalt.err (!%p985_p2)
}
   0x8   :  { %s989_s15 = scalar_lea.vmem %s15_s7, 32  ;;  %p994_p4 = scmp.lt.s32.totalorder %s15_s7, %s15_s7 }
   0x9   :  { %p990_p3 = scmp.ne.s32.totalorder %s15_s7, %s989_s15  ;;  %p995_p5 = scmp.lt.s32.totalorder %s989_s15, %s989_s15 }
   0xb   :  { %p996_p6 = por %p995_p5, %p994_p4 }
   0xd   :  { %p997_p7 = pnand %p996_p6, %p990_p3 }
   0xf   :  { %1000 = shalt.err (!%p997_p7)
}
  0x10   :  { %17 = dma.hbm_to_vmem [thread:$0]  %s1415_s0, 32, %s15_s7, [#allocation3]  }
  0x11   :  { %1023 = dma.done.wait [#allocation3], 32  }
  0x12   :  { %1024 = vsyncadd [#allocation3], 4294967264  ;;  %v22_v0 = vlaneseq  ;;  %v21_v11 = vld [vmem:[#allocation2] sm:$0x3]  ;;  %v1028_v46 = vmov 683565275  }
  0x13   :  { %v1029_v48 = vmov 2475754826   ;;  %v1030_v50 = vmov 2131351028   ;;  %v1031_v52 = vmov 2102212464  }
  0x14   :  { %v23_v1 = vshrl.u32 %v22_v0, 7  ;;  %v1032_v54 = vmov 920167782   ;;  %v1033_v62 = vmov 1326507024   ;;  %s1034_s0 = smov [#allocation5]  }
  0x15   :  { %s889_s18 = sshll.u32 %s1034_s0, 4  ;;  %s890_s18 = int_to_ptr.vmem [resolvable:$true] %s889_s18 }
  0x16   :  { %v25_v2 = vcvt.s32.f32 %v23_v1  ;;  %v24_v3 = vadd.s32 8, %v23_v1  ;;  %v36_v9 = vsub.s32 0, %v23_v1  ;;  %v40_v10 = vsub.s32 1, %v23_v1  ;;  %s1001_s19 = scalar_lea.vmem %s890_s18, 1024  ;;  %p1006_p9 = scmp.lt.s32.totalorder %s890_s18, %s890_s18 }
  0x17   :  { %p1002_p8 = scmp.ne.s32.totalorder %s890_s18, %s1001_s19  ;;  %p1007_p10 = scmp.lt.s32.totalorder %s1001_s19, %s1001_s19 }
  0x18   :  { %v27_v4 = vmul.f32 -0.6140227, %v25_v2  ;;  %v26_v5 = vcvt.s32.f32 %v24_v3  ;;  %v37_v12 = vrot.slane %v21_v11, %v36_v9  ;;  %v1059_v13 = vrot.slane %v21_v11, %v40_v10 }
  0x19   :  { %p1008_p11 = por %p1007_p10, %p1006_p9 }
  0x1a   :  { %v29_v6 = vmul.f32 1.442695, %v27_v4  ;;  %v28_v7 = vmul.f32 -0.6140227, %v26_v5 }
  0x1b   :  { %p1009_p12 = pnand %p1008_p11, %p1002_p8 }
  0x1c   :  { %959 = vpow2.f32 %v29_v6  ;;  %v31_v8 = vmul.f32 1.442695, %v28_v7 }
  0x1e   :  { %961 = vpow2.f32 %v31_v8 }
  0x26   :  { %v960_v14 = vpop.eup %959 }
  0x27   :  { %v1061_v15 = vmul.f32 %v960_v14, %v37_v12  ;;  %v1064_v16 = vmul.f32 %v960_v14, %v1059_v13 }
  0x28   :  { %v1066_v17 = vpop.eup %961 }
  0x29   :  { %v48_v18 = vand.u32 2147483647, %v1061_v15  ;;  %v51_v19 = vand.u32 2139095040, %v1061_v15  ;;  %v152_v20 = vand.u32 2147483647, %v1064_v16  ;;  %v155_v21 = vand.u32 2139095040, %v1064_v16 }
  0x2a   :  { %v1073_v23 = vmul.f32 %v1066_v17, %v37_v12  ;;  %vm50_vm13 = vcmp.lt.s32.totalorder %v1061_v15, 0  ;;  %vm154_vm15 = vcmp.lt.s32.totalorder %v1064_v16, 0 }
  0x2b   :  { %v52_v22 = vshrl.u32 %v51_v19, 23  ;;  %v55_v24 = vand.u32 8388607, %v48_v18  ;;  %v156_v25 = vshrl.u32 %v155_v21, 23  ;;  %v159_v26 = vand.u32 8388607, %v152_v20 }
  0x2c   :  { %v259_v29 = vand.u32 2139095040, %v1073_v23  ;;  %v256_v40 = vand.u32 2147483647, %v1073_v23  ;;  %vm1186_vm14 = vcmp.le.f32.partialorder %v48_v18, 0.7853982 }
  0x2d   :  { %v901_v27 = vadd.s32 4294967169, %v52_v22  ;;  %v905_v28 = vadd.s32 4294967169, %v156_v25  ;;  %v56_v31 = vor.u32 8388608, %v55_v24  ;;  %v160_v32 = vor.u32 8388608, %v159_v26 }
  0x2e   :  { %v260_v34 = vshrl.u32 %v259_v29, 23 }
  0x2f   :  { %v58_v30 = vadd.s32 1, %v901_v27  ;;  %v162_v33 = vadd.s32 1, %v905_v28  ;;  %v1081_v41 = vshll.u32 %v56_v31, 8  ;;  %v1085_v44 = vshll.u32 %v160_v32, 8 }
  0x30   :  { %v909_v36 = vadd.s32 4294967169, %v260_v34 }
  0x31   :  { %vm59_vm0 = vcmp.gt.s32.totalorder %v58_v30, 0  ;;  %vm163_vm1 = vcmp.gt.s32.totalorder %v162_v33, 0 }
  0x32   :  { %v60_v35 = vsel %vm59_vm0, %v58_v30, 0  ;;  %v164_v39 = vsel %vm163_vm1, %v162_v33, 0  ;;  %v1092_v56 = vadd.s32 1, %v909_v36 }
  0x33   :  { %v61_v37 = vshrl.u32 %v60_v35, 5  ;;  %v62_v38 = vand.u32 31, %v60_v35  ;;  %v1083_v42 = vshrl.u32 %v164_v39, 5  ;;  %v166_v43 = vand.u32 31, %v164_v39 }
  0x34   :  { %vm267_vm11 = vcmp.gt.s32.totalorder %v1092_v56, 0 }
  0x35   :  { %v63_v45 = vsub.s32 32, %v62_v38  ;;  %v65_v47 = vshll.u32 %v1028_v46, %v62_v38  ;;  %v68_v49 = vshll.u32 %v1029_v48, %v62_v38  ;;  %v71_v51 = vshll.u32 %v1030_v50, %v62_v38 }
  0x36   :  { %v74_v53 = vshll.u32 %v1031_v52, %v62_v38  ;;  %v77_v55 = vshll.u32 %v1032_v54, %v62_v38  ;;  %vm80_vm2 = vcmp.lt.s32.totalorder %v61_v37, 1  ;;  %vm81_vm3 = vcmp.lt.s32.totalorder %v61_v37, 2 }
  0x37   :  { %v64_v57 = vshrl.u32 %v1028_v46, %v63_v45  ;;  %v66_v58 = vshrl.u32 %v1029_v48, %v63_v45  ;;  %v69_v59 = vshrl.u32 %v1030_v50, %v63_v45  ;;  %v72_v60 = vshrl.u32 %v1031_v52, %v63_v45 }
  0x38   :  { %v75_v61 = vshrl.u32 %v1032_v54, %v63_v45  ;;  %v78_v63 = vshrl.u32 %v1033_v62, %v63_v45  ;;  %vm83_vm4 = vcmp.lt.s32.totalorder %v61_v37, 4  ;;  %v167_v3 = vsub.s32 32, %v166_v43 }
  0x39   :  { %v67_v0 = vor.u32 %v66_v58, %v65_v47  ;;  %v70_v1 = vor.u32 %v69_v59, %v68_v49  ;;  %v73_v2 = vor.u32 %v72_v60, %v71_v51  ;;  %vm82_vm5 = vcmp.lt.s32.totalorder %v61_v37, 3 }
  0x3a   :  { %v76_v4 = vor.u32 %v75_v61, %v74_v53  ;;  %v79_v5 = vor.u32 %v78_v63, %v77_v55  ;;  %v169_v6 = vshll.u32 %v1028_v46, %v166_v43  ;;  %v172_v19 = vshll.u32 %v1029_v48, %v166_v43 }
  0x3b   :  { %v84_v7 = vsel %vm80_vm2, %v64_v57, %v67_v0  ;;  %v85_v8 = vsel %vm83_vm4, %v73_v2, 2102212464  ;;  %v88_v9 = vsel %vm80_vm2, %v67_v0, %v70_v1  ;;  %v92_v10 = vsel %vm80_vm2, %v70_v1, %v73_v2 }
  0x3c   :  { %v86_v11 = vsel %vm82_vm5, %v70_v1, %v85_v8  ;;  %v89_v12 = vsel %vm83_vm4, %v76_v4, 920167782  ;;  %v93_v14 = vsel %vm83_vm4, %v79_v5, 1326507024  ;;  %v168_v24 = vshrl.u32 %v1028_v46, %v167_v3 }
  0x3d   :  { %v90_v21 = vsel %vm82_vm5, %v73_v2, %v89_v12  ;;  %v94_v22 = vsel %vm82_vm5, %v76_v4, %v93_v14  ;;  %v170_v25 = vshrl.u32 %v1029_v48, %v167_v3  ;;  %v87_v26 = vsel %vm81_vm3, %v84_v7, %v86_v11 }
  0x3e   :  { %v91_v27 = vsel %vm81_vm3, %v88_v9, %v90_v21  ;;  %v95_v28 = vsel %vm81_vm3, %v92_v10, %v94_v22  ;;  %v173_v29 = vshrl.u32 %v1030_v50, %v167_v3  ;;  %v175_v36 = vshll.u32 %v1030_v50, %v166_v43 }
  0x3f   :  { %v1112_v30 = vmul.u32.u64.low %v1081_v41, %v95_v28  ;;  %v1113_v31 = vmul.u32.u64.high %v1081_v41, %v95_v28, %v1112_v30  ;;  %v1116_v32 = vmul.u32.u64.low %v1081_v41, %v91_v27  ;;  %v1117_v33 = vmul.u32.u64.high %v1081_v41, %v91_v27, %v1116_v32 }
  0x40   :  { %v171_v34 = vor.u32 %v170_v25, %v169_v6  ;;  %v174_v35 = vor.u32 %v173_v29, %v172_v19  ;;  %v176_v38 = vshrl.u32 %v1031_v52, %v167_v3  ;;  %v178_v37 = vshll.u32 %v1031_v52, %v166_v43 }
  0x41   :  { %v179_v39 = vshrl.u32 %v1032_v54, %v167_v3  ;;  %v181_v45 = vshll.u32 %v1032_v54, %v166_v43  ;;  %v182_v47 = vshrl.u32 %v1033_v62, %v167_v3  ;;  %v103_v49 = vmul.u32 %v1081_v41, %v87_v26 }
  0x42   :  { %v177_v51 = vor.u32 %v176_v38, %v175_v36  ;;  %vm184_vm6 = vcmp.lt.s32.totalorder %v1083_v42, 1  ;;  %vm185_vm7 = vcmp.lt.s32.totalorder %v1083_v42, 2  ;;  %vm105_vm8 = vc.u32 %v1113_v31, %v1116_v32 }
  0x43   :  { %v106_v53 = vadd.s32 1, %v1117_v33  ;;  %v180_v55 = vor.u32 %v179_v39, %v178_v37  ;;  %vm186_vm9 = vcmp.lt.s32.totalorder %v1083_v42, 3  ;;  %v183_v57 = vor.u32 %v182_v47, %v181_v45 }
  0x44   :  { %vm187_vm10 = vcmp.lt.s32.totalorder %v1083_v42, 4  ;;  %v188_v43 = vsel %vm184_vm6, %v168_v24, %v171_v34  ;;  %v192_v58 = vsel %vm184_vm6, %v171_v34, %v174_v35  ;;  %v196_v61 = vsel %vm184_vm6, %v174_v35, %v177_v51 }
  0x45   :  { %v107_v41 = vsel %vm105_vm8, %v106_v53, %v1117_v33  ;;  %v189_v59 = vsel %vm187_vm10, %v177_v51, 2102212464  ;;  %v193_v60 = vsel %vm187_vm10, %v180_v55, 920167782  ;;  %v197_v2 = vsel %vm187_vm10, %v183_v57, 1326507024 }
  0x46   :  { %v108_v63 = vadd.s32 %v107_v41, %v103_v49  ;;  %v190_v0 = vsel %vm186_vm9, %v174_v35, %v189_v59  ;;  %v194_v1 = vsel %vm186_vm9, %v177_v51, %v193_v60  ;;  %v198_v5 = vsel %vm186_vm9, %v180_v55, %v197_v2 }
  0x47   :  { %v191_v3 = vsel %vm185_vm7, %v188_v43, %v190_v0  ;;  %v195_v4 = vsel %vm185_vm7, %v192_v58, %v194_v1  ;;  %v199_v7 = vsel %vm185_vm7, %v196_v61, %v198_v5  ;;  %v268_v12 = vsel %vm267_vm11, %v1092_v56, 0 }
  0x48   :  { %v109_v6 = vadd.s32 536870912, %v108_v63  ;;  %v1143_v8 = vmul.u32.u64.low %v1085_v44, %v195_v4  ;;  %v1144_v9 = vmul.u32.u64.high %v1085_v44, %v195_v4, %v1143_v8  ;;  %v270_v19 = vand.u32 31, %v268_v12 }
  0x49   :  { %v1148_v10 = vmul.u32.u64.low %v1085_v44, %v199_v7  ;;  %v1149_v11 = vmul.u32.u64.high %v1085_v44, %v199_v7, %v1148_v10  ;;  %v207_v21 = vmul.u32 %v1085_v44, %v191_v3  ;;  %v263_v22 = vand.u32 8388607, %v256_v40 }
  0x4a   :  { %v110_v14 = vshrl.u32 %v109_v6, 30  ;;  %v1157_v42 = vmul.f32 %v1066_v17, %v1059_v13  ;;  %v210_v25 = vadd.s32 1, %v1144_v9  ;;  %v271_v26 = vsub.s32 32, %v270_v19 }
  0x4b   :  { %vm209_vm12 = vc.u32 %v1149_v11, %v1143_v8  ;;  %v264_v29 = vor.u32 8388608, %v263_v22  ;;  %v1167_v30 = vshrl.u32 %v268_v12, 5  ;;  %v273_v34 = vshll.u32 %v1028_v46, %v270_v19 }
  0x4c   :  { %v111_v24 = vshll.u32 %v110_v14, 30  ;;  %v211_v44 = vsel %vm209_vm12, %v210_v25, %v1144_v9  ;;  %v360_v27 = vand.u32 2147483647, %v1157_v42  ;;  %v363_v13 = vand.u32 2139095040, %v1157_v42 }
  0x4d   :  { %v212_v28 = vadd.s32 %v211_v44, %v207_v21  ;;  %v134_v33 = vsub.s32 4, %v110_v14  ;;  %v276_v35 = vshll.u32 %v1029_v48, %v270_v19  ;;  %v274_v38 = vshrl.u32 %v1029_v48, %v271_v26 }
  0x4e   :  { %v1163_v56 = vsub.s32 %v108_v63, %v111_v24  ;;  %v277_v37 = vshrl.u32 %v1030_v50, %v271_v26  ;;  %v279_v39 = vshll.u32 %v1030_v50, %v270_v19  ;;  %v280_v47 = vshrl.u32 %v1031_v52, %v271_v26 }
  0x4f   :  { %v213_v36 = vadd.s32 536870912, %v212_v28  ;;  %v282_v49 = vshll.u32 %v1031_v52, %v270_v19  ;;  %v283_v51 = vshrl.u32 %v1032_v54, %v271_v26  ;;  %v285_v55 = vshll.u32 %v1032_v54, %v270_v19 }
  0x50   :  { %v114_v17 = vsub.s32 0, %v1163_v56  ;;  %v286_v57 = vshrl.u32 %v1033_v62, %v271_v26  ;;  %v1182_v43 = vshll.u32 %v264_v29, 8  ;;  %v104_v41 = vadd.s32 %v1116_v32, %v1113_v31 }
  0x51   :  { %v214_v53 = vshrl.u32 %v213_v36, 30  ;;  %v135_v60 = vsel %vm50_vm13, %v134_v33, %v110_v14  ;;  %v364_v61 = vshrl.u32 %v363_v13, 23  ;;  %v272_v0 = vshrl.u32 %v1028_v46, %v271_v26 }
  0x52   :  { %v902_v45 = vmin.u32 %v114_v17, %v1163_v56  ;;  %v275_v1 = vor.u32 %v274_v38, %v273_v34  ;;  %v278_v2 = vor.u32 %v277_v37, %v276_v35  ;;  %v281_v18 = vor.u32 %v280_v47, %v279_v39 }
  0x53   :  { %v215_v63 = vshll.u32 %v214_v53, 30  ;;  %v284_v4 = vor.u32 %v283_v51, %v282_v49  ;;  %vm288_vm0 = vcmp.lt.s32.totalorder %v1167_v30, 1  ;;  %v238_v31 = vsub.s32 4, %v214_v53 }
  0x54   :  { %v116_v59 = vclz %v902_v45  ;;  %v287_v32 = vor.u32 %v286_v57, %v285_v55  ;;  %vm291_vm1 = vcmp.lt.s32.totalorder %v1167_v30, 4  ;;  %vm1202_vm3 = vcmp.le.f32.partialorder %v152_v20, 0.7853982 }
  0x55   :  { %v1197_v5 = vsub.s32 %v212_v28, %v215_v63  ;;  %vm289_vm4 = vcmp.lt.s32.totalorder %v1167_v30, 2  ;;  %vm290_vm5 = vcmp.lt.s32.totalorder %v1167_v30, 3  ;;  %v293_v7 = vsel %vm291_vm1, %v281_v18, 2102212464 }
  0x56   :  { %v903_v3 = vadd.s32 4294967294, %v116_v59  ;;  %v292_v12 = vsel %vm288_vm0, %v272_v0, %v275_v1  ;;  %v296_v14 = vsel %vm288_vm0, %v275_v1, %v278_v2  ;;  %v297_v22 = vsel %vm291_vm1, %v284_v4, 920167782 }
  0x57   :  { %v218_v10 = vsub.s32 0, %v1197_v5  ;;  %v294_v25 = vsel %vm290_vm5, %v278_v2, %v293_v7  ;;  %v298_v26 = vsel %vm290_vm5, %v281_v18, %v297_v22  ;;  %v300_v44 = vsel %vm288_vm0, %v278_v2, %v281_v18 }
  0x58   :  { %vm904_vm2 = vcmp.lt.s32.totalorder %v903_v3, 0  ;;  %v301_v13 = vsel %vm291_vm1, %v287_v32, 1326507024  ;;  %v1231_v17 = vsel %vm1186_vm14, 0, %v135_v60  ;;  %v239_v34 = vsel %vm154_vm15, %v238_v31, %v214_v53 }
  0x59   :  { %v119_v9 = vsel %vm904_vm2, 0, %v903_v3  ;;  %v906_v24 = vmin.u32 %v218_v10, %v1197_v5  ;;  %v913_v35 = vadd.s32 4294967169, %v364_v61  ;;  %v295_v37 = vsel %vm289_vm4, %v292_v12, %v294_v25 }
  0x5a   :  { %v120_v20 = vsub.s32 32, %v119_v9  ;;  %v121_v19 = vshll.u32 %v1163_v56, %v119_v9  ;;  %v124_v21 = vsub.s32 4294967266, %v119_v9  ;;  %v299_v56 = vsel %vm289_vm4, %v296_v14, %v298_v26 }
  0x5b   :  { %v220_v33 = vclz %v906_v24  ;;  %v302_v39 = vsel %vm290_vm5, %v284_v4, %v301_v13  ;;  %v1242_v49 = vmul.u32.u64.low %v1182_v43, %v299_v56  ;;  %v1243_v51 = vmul.u32.u64.high %v1182_v43, %v299_v56, %v1242_v49 }
  0x5c   :  { %v122_v28 = vshrl.u32 %v104_v41, %v120_v20  ;;  %v125_v29 = vadd.s32 127, %v124_v21  ;;  %v303_v47 = vsel %vm289_vm4, %v300_v44, %v302_v39  ;;  %v208_v59 = vadd.s32 %v1143_v8, %v1149_v11 }
  0x5d   :  { %v907_v45 = vadd.s32 4294967294, %v220_v33  ;;  %v1247_v57 = vmul.u32.u64.low %v1182_v43, %v303_v47  ;;  %v1248_v41 = vmul.u32.u64.high %v1182_v43, %v303_v47, %v1247_v57  ;;  %v241_v60 = vsel %vm1202_vm3, 0, %v239_v34 }
  0x5e   :  { %v123_v36 = vor.u32 %v122_v28, %v121_v19  ;;  %v126_v38 = vshll.u32 %v125_v29, 23  ;;  %v370_v30 = vadd.s32 1, %v913_v35  ;;  %v141_v63 = vadd.s32 3, %v1231_v17 }
  0x5f   :  { %vm908_vm6 = vcmp.lt.s32.totalorder %v907_v45, 0  ;;  %v311_v1 = vmul.u32 %v1182_v43, %v295_v37  ;;  %v314_v4 = vadd.s32 1, %v1243_v51  ;;  %v245_v32 = vadd.s32 3, %v241_v60 }
  0x60   :  { %v127_v55 = vor.u32 4788187, %v126_v38  ;;  %v130_v53 = vcvt.s32.f32 %v123_v36  ;;  %v223_v0 = vsel %vm908_vm6, 0, %v907_v45  ;;  %vm313_vm7 = vc.u32 %v1248_v41, %v1242_v49 }
  0x61   :  { %v224_v2 = vsub.s32 32, %v223_v0  ;;  %v225_v3 = vshll.u32 %v1197_v5, %v223_v0  ;;  %v228_v18 = vsub.s32 4294967266, %v223_v0  ;;  %vm371_vm8 = vcmp.gt.s32.totalorder %v370_v30, 0 }
  0x62   :  { %v128_v61 = vand.u32 2147483647, %v127_v55  ;;  %v315_v7 = vsel %vm313_vm7, %v314_v4, %v1243_v51  ;;  %v372_v9 = vsel %vm371_vm8, %v370_v30, 0  ;;  %v1263_v43 = vand.u32 8388607, %v360_v27 }
  0x63   :  { %v226_v8 = vshrl.u32 %v208_v59, %v224_v2  ;;  %v229_v11 = vadd.s32 127, %v228_v18  ;;  %v316_v12 = vadd.s32 %v315_v7, %v311_v1  ;;  %v374_v5 = vand.u32 31, %v372_v9 }
  0x64   :  { %v131_v31 = vmul.f32 %v130_v53, %v128_v61  ;;  %v1267_v21 = vand.u32 3, %v141_v63  ;;  %v1272_v28 = vand.u32 3, %v245_v32  ;;  %v368_v56 = vor.u32 8388608, %v1263_v43 }
  0x65   :  { %v227_v14 = vor.u32 %v226_v8, %v225_v3  ;;  %v230_v20 = vshll.u32 %v229_v11, 23  ;;  %v317_v22 = vadd.s32 536870912, %v316_v12  ;;  %v375_v24 = vsub.s32 32, %v374_v5 }
  0x66   :  { %v132_v10 = vxor.u32 2147483648, %v131_v31  ;;  %v1277_v13 = vshrl.u32 %v372_v9, 5  ;;  %v377_v34 = vshll.u32 %v1028_v46, %v374_v5  ;;  %v380_v35 = vshll.u32 %v1029_v48, %v374_v5 }
  0x67   :  { %v231_v26 = vor.u32 4788187, %v230_v20  ;;  %v234_v44 = vcvt.s32.f32 %v227_v14  ;;  %v1274_v29 = vshrl.u32 %v317_v22, 30  ;;  %vm147_vm9 = vcmp.eq.s32.totalorder %v1267_v21, 2 }
  0x68   :  { %v133_v19 = vsel %vm50_vm13, %v132_v10, %v131_v31  ;;  %v378_v36 = vshrl.u32 %v1029_v48, %v375_v24  ;;  %v381_v38 = vshrl.u32 %v1030_v50, %v375_v24  ;;  %v383_v37 = vshll.u32 %v1030_v50, %v374_v5 }
  0x69   :  { %v136_v25 = vsel %vm1186_vm14, %v1061_v15, %v133_v19  ;;  %v232_v33 = vand.u32 2147483647, %v231_v26  ;;  %v319_v58 = vshll.u32 %v1274_v29, 30  ;;  %vm144_vm10 = vcmp.eq.s32.totalorder %v1267_v21, 0 }
  0x6a   :  { %963 = vcosq.f32 %v136_v25  ;;  %v384_v45 = vshrl.u32 %v1031_v52, %v375_v24  ;;  %v386_v47 = vshll.u32 %v1031_v52, %v374_v5  ;;  %v387_v51 = vshrl.u32 %v1032_v54, %v375_v24 }
  0x6b   :  { %965 = vsinq.f32 %v136_v25  ;;  %v235_v39 = vmul.f32 %v234_v44, %v232_v33  ;;  %vm143_vm11 = vcmp.lt.s32.totalorder %v1267_v21, 2  ;;  %v1291_v55 = vsub.s32 %v316_v12, %v319_v58 }
  0x6c   :  { %v389_v53 = vshll.u32 %v1032_v54, %v374_v5  ;;  %v1295_v48 = vand.u32 3, %v1231_v17  ;;  %v1297_v57 = vand.u32 3, %v241_v60  ;;  %vm140_vm12 = vweird.f32 %v1061_v15 }
  0x6d   :  { %v236_v50 = vxor.u32 2147483648, %v235_v39  ;;  %v376_v59 = vshrl.u32 %v1028_v46, %v375_v24  ;;  %v388_v30 = vor.u32 %v387_v51, %v386_v47  ;;  %v390_v52 = vshrl.u32 %v1033_v62, %v375_v24 }
  0x6e   :  { %v312_v61 = vadd.s32 %v1242_v49, %v1248_v41  ;;  %v322_v63 = vsub.s32 0, %v1291_v55  ;;  %v379_v0 = vor.u32 %v378_v36, %v377_v34  ;;  %v382_v54 = vor.u32 %v381_v38, %v380_v35 }
  0x6f   :  { %v237_v17 = vsel %vm154_vm15, %v236_v50, %v235_v39  ;;  %v385_v60 = vor.u32 %v384_v45, %v383_v37  ;;  %vm392_vm13 = vcmp.lt.s32.totalorder %v1277_v13, 1  ;;  %vm395_vm14 = vcmp.lt.s32.totalorder %v1277_v13, 4 }
  0x70   :  { %v240_v46 = vsel %vm1202_vm3, %v1064_v16, %v237_v17  ;;  %v910_v62 = vmin.u32 %v322_v63, %v1291_v55  ;;  %v391_v1 = vor.u32 %v390_v52, %v389_v53  ;;  %vm394_vm0 = vcmp.lt.s32.totalorder %v1277_v13, 3 }
  0x71   :  { %967 = vcosq.f32 %v240_v46  ;;  %v396_v49 = vsel %vm392_vm13, %v376_v59, %v379_v0  ;;  %v397_v41 = vsel %vm395_vm14, %v385_v60, 2102212464  ;;  %v401_v2 = vsel %vm395_vm14, %v388_v30, 920167782 }
  0x72   :  { %969 = vsinq.f32 %v240_v46  ;;  %v324_v18 = vclz %v910_v62  ;;  %vm393_vm15 = vcmp.lt.s32.totalorder %v1277_v13, 2  ;;  %v400_v6 = vsel %vm392_vm13, %v379_v0, %v382_v54 }
  0x73   :  { %vm251_vm1 = vcmp.eq.s32.totalorder %v1272_v28, 2  ;;  %v398_v32 = vsel %vm394_vm0, %v382_v54, %v397_v41  ;;  %v402_v8 = vsel %vm394_vm0, %v385_v60, %v401_v2  ;;  %v408_v11 = vshll.u32 %v368_v56, 8 }
  0x74   :  { %v964_v3 = vpop.eup %963  ;;  %vm248_vm2 = vcmp.eq.s32.totalorder %v1272_v28, 0  ;;  %v911_v9 = vadd.s32 4294967294, %v324_v18  ;;  %v399_v10 = vsel %vm393_vm15, %v396_v49, %v398_v32  ;;  %vm562_vm3 = vcmp.lt.s32.totalorder %v1295_v48, 2 }
  0x75   :  { %v966_v4 = vpop.eup %965  ;;  %v148_v31 = vxor.u32 2147483648, %v964_v3  ;;  %vm247_vm4 = vcmp.lt.s32.totalorder %v1272_v28, 2  ;;  %v403_v43 = vsel %vm393_vm15, %v400_v6, %v402_v8  ;;  %v404_v5 = vsel %vm392_vm13, %v382_v54, %v385_v60 }
  0x76   :  { %v145_v7 = vxor.u32 2147483648, %v966_v4  ;;  %v405_v14 = vsel %vm395_vm14, %v391_v1, 1326507024  ;;  %vm244_vm5 = vweird.f32 %v1064_v16  ;;  %vm912_vm6 = vcmp.lt.s32.totalorder %v911_v9, 0 }
  0x77   :  { %v149_v12 = vsel %vm147_vm9, %v148_v31, %v966_v4  ;;  %v406_v19 = vsel %vm394_vm0, %v388_v30, %v405_v14  ;;  %vm563_vm7 = vcmp.eq.s32.totalorder %v1295_v48, 0  ;;  %v327_v24 = vsel %vm912_vm6, 0, %v911_v9 }
  0x78   :  { %v146_v20 = vsel %vm144_vm10, %v964_v3, %v145_v7  ;;  %v407_v25 = vsel %vm393_vm15, %v404_v5, %v406_v19  ;;  %v565_v26 = vsel %vm563_vm7, %v964_v3, %v145_v7  ;;  %v328_v56 = vsub.s32 32, %v327_v24 }
  0x79   :  { %v150_v22 = vsel %vm143_vm11, %v146_v20, %v149_v12  ;;  %v329_v33 = vshll.u32 %v1291_v55, %v327_v24  ;;  %v332_v34 = vsub.s32 4294967266, %v327_v24  ;;  %v342_v13 = vsub.s32 4, %v1274_v29 }
  0x7a   :  { %v151_v44 = vsel %vm140_vm12, nan, %v150_v22  ;;  %v1354_v35 = vmul.u32.u64.low %v408_v11, %v407_v25  ;;  %v1355_v58 = vmul.u32.u64.high %v408_v11, %v407_v25, %v1354_v35  ;;  %v330_v21 = vshrl.u32 %v312_v61, %v328_v56 }
  0x7b   :  { %464 = vst [vmem:[#allocation5] sm:$0xff] %v151_v44  ;;  %v1357_v36 = vmul.u32.u64.low %v408_v11, %v403_v43  ;;  %v1358_v38 = vmul.u32.u64.high %v408_v11, %v403_v43, %v1357_v36  ;;  %v333_v37 = vadd.s32 127, %v332_v34  ;;  %vm566_vm8 = vcmp.eq.s32.totalorder %v1295_v48, 2  ;;  %v968_v39 = vpop.eup %967 }
  0x7c   :  { %v415_v45 = vmul.u32 %v408_v11, %v399_v10  ;;  %v568_v47 = vsel %vm566_vm8, %v148_v31, %v966_v4  ;;  %vm666_vm9 = vcmp.eq.s32.totalorder %v1297_v57, 0  ;;  %vm669_vm10 = vcmp.eq.s32.totalorder %v1297_v57, 2  ;;  %v970_v51 = vpop.eup %969 }
  0x7d   :  { %v252_v55 = vxor.u32 2147483648, %v968_v39  ;;  %v331_v53 = vor.u32 %v330_v21, %v329_v33  ;;  %v334_v50 = vshll.u32 %v333_v37, 23  ;;  %v569_v59 = vsel %vm562_vm3, %v565_v26, %v568_v47 }
  0x7e   :  { %v249_v30 = vxor.u32 2147483648, %v970_v51  ;;  %vm417_vm11 = vc.u32 %v1355_v58, %v1357_v36  ;;  %v418_v52 = vadd.s32 1, %v1358_v38  ;;  %vm665_vm13 = vcmp.lt.s32.totalorder %v1297_v57, 2 }
  0x7f   :  { %v253_v61 = vsel %vm251_vm1, %v252_v55, %v970_v51  ;;  %v335_v63 = vor.u32 4788187, %v334_v50  ;;  %v338_v0 = vcvt.s32.f32 %v331_v53  ;;  %v570_v54 = vsel %vm140_vm12, nan, %v569_v59 }
  0x80   :  { %v250_v48 = vsel %vm248_vm2, %v968_v39, %v249_v30  ;;  %v419_v17 = vsel %vm417_vm11, %v418_v52, %v1358_v38  ;;  %880 = vst [vmem:[#allocation5 + $0x20] sm:$0xff] %v570_v54  ;;  %v668_v60 = vsel %vm666_vm9, %v968_v39, %v249_v30  ;;  %v671_v46 = vsel %vm669_vm10, %v252_v55, %v970_v51 }
  0x81   :  { %v254_v62 = vsel %vm247_vm4, %v250_v48, %v253_v61  ;;  %v336_v1 = vand.u32 2147483647, %v335_v63  ;;  %v420_v49 = vadd.s32 %v419_v17, %v415_v45  ;;  %v672_v41 = vsel %vm665_vm13, %v668_v60, %v671_v46 }
  0x82   :  { %v255_v15 = vsel %vm244_vm5, nan, %v254_v62  ;;  %v673_v2 = vsel %vm244_vm5, nan, %v672_v41  ;;  %vm258_vm12 = vcmp.lt.s32.totalorder %v1073_v23, 0  ;;  %vm257_vm14 = vcmp.le.f32.partialorder %v256_v40, 0.7853982 }
  0x83   :  { %465 = vst [vmem:[#allocation5 + $0x8] sm:$0xff] %v255_v15  ;;  %v339_v3 = vmul.f32 %v338_v0, %v336_v1  ;;  %v421_v18 = vadd.s32 536870912, %v420_v49  ;;  %881 = vst [vmem:[#allocation5 + $0x28] sm:$0xff] %v673_v2  ;;  %v343_v57 = vsel %vm258_vm12, %v342_v13, %v1274_v29  ;;  %v416_v5 = vadd.s32 %v1357_v36, %v1355_v58 }
  0x84   :  { %v345_v31 = vsel %vm257_vm14, 0, %v343_v57  ;;  %vm348_vm6 = vweird.f32 %v1073_v23  ;;  %vm362_vm7 = vcmp.lt.s32.totalorder %v1157_v42, 0  ;;  %vm361_vm8 = vcmp.le.f32.partialorder %v360_v27, 0.7853982 }
  0x85   :  { %v340_v28 = vxor.u32 2147483648, %v339_v3  ;;  %v422_v6 = vshrl.u32 %v421_v18, 30  ;;  %v349_v11 = vadd.s32 3, %v345_v31  ;;  %v767_v43 = vand.u32 3, %v345_v31 }
  0x87   :  { %v341_v4 = vsel %vm258_vm12, %v340_v28, %v339_v3  ;;  %v423_v32 = vshll.u32 %v422_v6, 30  ;;  %v350_v10 = vand.u32 3, %v349_v11  ;;  %vm772_vm3 = vcmp.eq.s32.totalorder %v767_v43, 2 }
  0x88   :  { %v344_v8 = vsel %vm257_vm14, %v1073_v23, %v341_v4  ;;  %vm768_vm4 = vcmp.lt.s32.totalorder %v767_v43, 2  ;;  %vm769_vm5 = vcmp.eq.s32.totalorder %v767_v43, 0  ;;  %v446_v23 = vsub.s32 4, %v422_v6 }
  0x89   :  { %971 = vcosq.f32 %v344_v8  ;;  %v424_v16 = vsub.s32 %v420_v49, %v423_v32  ;;  %vm351_vm0 = vcmp.lt.s32.totalorder %v350_v10, 2  ;;  %vm352_vm15 = vcmp.eq.s32.totalorder %v350_v10, 0 }
  0x8a   :  { %973 = vsinq.f32 %v344_v8  ;;  %vm355_vm1 = vcmp.eq.s32.totalorder %v350_v10, 2  ;;  %v447_v50 = vsel %vm362_vm7, %v446_v23, %v422_v6 }
  0x8b   :  { %v426_v7 = vsub.s32 0, %v424_v16  ;;  %v449_v52 = vsel %vm361_vm8, 0, %v447_v50 }
  0x8c   :  { %v453_v61 = vadd.s32 3, %v449_v52  ;;  %v870_v0 = vand.u32 3, %v449_v52 }
  0x8d   :  { %v914_v9 = vmin.u32 %v426_v7, %v424_v16 }
  0x8e   :  { %v454_v63 = vand.u32 3, %v453_v61  ;;  %vm875_vm10 = vcmp.eq.s32.totalorder %v870_v0, 2  ;;  %vm872_vm13 = vcmp.eq.s32.totalorder %v870_v0, 0  ;;  %vm871_vm14 = vcmp.lt.s32.totalorder %v870_v0, 2 }
  0x8f   :  { %v428_v12 = vclz %v914_v9 }
  0x90   :  { %vm459_vm9 = vcmp.eq.s32.totalorder %v454_v63, 2  ;;  %vm456_vm11 = vcmp.eq.s32.totalorder %v454_v63, 0  ;;  %vm455_vm12 = vcmp.lt.s32.totalorder %v454_v63, 2 }
  0x91   :  { %v915_v29 = vadd.s32 4294967294, %v428_v12 }
  0x93   :  { %v972_v40 = vpop.eup %971  ;;  %vm916_vm2 = vcmp.lt.s32.totalorder %v915_v29, 0 }
  0x94   :  { %v974_v14 = vpop.eup %973  ;;  %v356_v20 = vxor.u32 2147483648, %v972_v40  ;;  %v431_v19 = vsel %vm916_vm2, 0, %v915_v29 }
  0x95   :  { %v353_v22 = vxor.u32 2147483648, %v974_v14  ;;  %v432_v24 = vsub.s32 32, %v431_v19  ;;  %v433_v25 = vshll.u32 %v424_v16, %v431_v19  ;;  %v436_v26 = vsub.s32 4294967266, %v431_v19 }
  0x96   :  { %v357_v44 = vsel %vm355_vm1, %v356_v20, %v974_v14  ;;  %v774_v56 = vsel %vm772_vm3, %v356_v20, %v974_v14 }
  0x97   :  { %v354_v33 = vsel %vm352_vm15, %v972_v40, %v353_v22  ;;  %v434_v34 = vshrl.u32 %v416_v5, %v432_v24  ;;  %v437_v35 = vadd.s32 127, %v436_v26  ;;  %v771_v58 = vsel %vm769_vm5, %v972_v40, %v353_v22 }
  0x98   :  { %v358_v36 = vsel %vm351_vm0, %v354_v33, %v357_v44  ;;  %v775_v38 = vsel %vm768_vm4, %v771_v58, %v774_v56  ;;  %vm452_vm0 = vweird.f32 %v1157_v42 }
  0x99   :  { %v359_v21 = vsel %vm348_vm6, nan, %v358_v36  ;;  %v435_v37 = vor.u32 %v434_v34, %v433_v25  ;;  %v438_v13 = vshll.u32 %v437_v35, 23  ;;  %v776_v39 = vsel %vm348_vm6, nan, %v775_v38 }
  0x9a   :  { %466 = vst [vmem:[#allocation5 + $0x10] sm:$0xff] %v359_v21  ;;  %882 = vst [vmem:[#allocation5 + $0x30] sm:$0xff] %v776_v39 }
  0x9b   :  { %v439_v45 = vor.u32 4788187, %v438_v13  ;;  %v442_v47 = vcvt.s32.f32 %v435_v37 }
  0x9d   :  { %v440_v51 = vand.u32 2147483647, %v439_v45 }
  0x9f   :  { %v443_v55 = vmul.f32 %v442_v47, %v440_v51 }
  0xa1   :  { %v444_v53 = vxor.u32 2147483648, %v443_v55 }
  0xa3   :  { %v445_v59 = vsel %vm362_vm7, %v444_v53, %v443_v55 }
  0xa4   :  { %v448_v30 = vsel %vm361_vm8, %v1157_v42, %v445_v59 }
  0xa5   :  { %975 = vcosq.f32 %v448_v30 }
  0xa6   :  { %977 = vsinq.f32 %v448_v30 }
  0xaf   :  { %v976_v54 = vpop.eup %975 }
  0xb0   :  { %v978_v48 = vpop.eup %977  ;;  %v460_v17 = vxor.u32 2147483648, %v976_v54 }
  0xb1   :  { %v457_v27 = vxor.u32 2147483648, %v978_v48 }
  0xb2   :  { %v461_v60 = vsel %vm459_vm9, %v460_v17, %v978_v48  ;;  %v877_v46 = vsel %vm875_vm10, %v460_v17, %v978_v48 }
  0xb3   :  { %v458_v62 = vsel %vm456_vm11, %v976_v54, %v457_v27  ;;  %v874_v1 = vsel %vm872_vm13, %v976_v54, %v457_v27 }
  0xb4   :  { %v462_v49 = vsel %vm455_vm12, %v458_v62, %v461_v60  ;;  %v878_v41 = vsel %vm871_vm14, %v874_v1, %v877_v46 }
  0xb5   :  { %v463_v15 = vsel %vm452_vm0, nan, %v462_v49  ;;  %v879_v2 = vsel %vm452_vm0, nan, %v878_v41 }
  0xb6   :  { %467 = vst [vmem:[#allocation5 + $0x18] sm:$0xff] %v463_v15  ;;  %883 = vst [vmem:[#allocation5 + $0x38] sm:$0xff] %v879_v2 }
  0xb7   :  { %1012 = shalt.err (!%p1009_p12)
}
  0xb8   :  { %s1013_s22 = scalar_lea.hbm %s1416_s1, 1024 }
  0xb9   :  { %p1014_p13 = scmp.ne.s32.totalorder %s1416_s1, %s1013_s22  ;;  %p1017_p0 = scmp.lt.u32.totalorder %s1013_s22, %s1416_s1 }
  0xbb   :  { %p1019_p1 = pnand %p1017_p0, %p1014_p13 }
  0xbd   :  { %1022 = shalt.err (!%p1019_p1)
}
  0xbe   :  { %s1035_s27 = smov 256   ;;  %s1036_s28 = smov 16  }
  0xbf   :  { %895 = dma.vmem_to_hbm [thread:$0]  %s890_s18, 1024, %s1416_s1, [#allocation4], %s1035_s27, %s1035_s27, %s1036_s28  }
  0xc0   :  { %1025 = dma.done.wait [#allocation4], 1024  }
  0xc1   :  { %1026 = vsyncadd [#allocation4], 4294966272 }
  0xc2   :  { %899 = vsyncpa [#allocation3], 1 }
  0xc3   :  { %900 = vsyncpa [#allocation4], 1 }

</bundles_post_ra>
